<compile_context>
chip_gen: v7x
topology: tpu7x:2x2x1
jax: 0.10.0
libtpu: 0.0.40
codegen_flags: <defaults>
</compile_context>

<pallas_src>
import jax
import jax.numpy as jnp
import numpy as np
from jax.experimental import pallas as pl
from jax.experimental.pallas import tpu as pltpu


def _round_up(x, m):
    return (x + m - 1) // m * m


# ----------------------------- Pallas kernel ------------------------------ #
def make_textcnn_kernel(tb, l_pad, n_pad, e, max_fs):
    """Shifted-matmul conv + bias + ReLU + masked max-pool + fc.

    Operands (all VMEM resident, pre-packed by the wrapper):
      emb_ref  : [tb, s_pad, e]    padded embeddings for this batch tile
      w_ref    : [max_fs*e, n_pad] all conv filters fused along N (zero padded)
      b_ref    : [1, n_pad]        fused conv bias
      mask_ref : [l_pad, n_pad]    1.0 where the time position is valid for
                                   that column's filter size, else 0.0
      fcw_ref  : [n_pad, out_pad]  fc weight (transposed, zero padded)
      fcb_ref  : [1, out_pad]      fc bias (zero padded)
      out_ref  : [tb, out_pad]     logits (padded lanes; wrapper slices)
    """

    def kernel(emb_ref, w_ref, b_ref, mask_ref, fcw_ref, fcb_ref, out_ref):
        emb = emb_ref[...]                                    # [tb, s_pad, e]
        conv = jnp.zeros((tb * l_pad, n_pad), jnp.float32)
        # max_fs shifted K=E matmuls accumulate into one f32 tile.  Same MXU
        # pass count as one fused K=max_fs*E matmul, but the HBM stream is
        # only the E-wide embeddings (no 4x im2col duplication).
        for k in range(max_fs):                               # static unroll
            x = emb[:, k:k + l_pad, :].reshape(tb * l_pad, e)
            conv = conv + jnp.dot(x, w_ref[k * e:(k + 1) * e, :],
                                  preferred_element_type=jnp.float32)
        conv = jnp.maximum(conv + b_ref[...], 0.0)            # bias + ReLU
        # Zero out-of-range time positions per filter size (exact: post-ReLU
        # values are >= 0 so a 0 fill never beats a valid max).
        conv = conv.reshape(tb, l_pad, n_pad) * mask_ref[...]
        pooled = jnp.max(conv, axis=1)                        # [tb, n_pad]
        # Dropout is identity at inference; fc on the lane-padded concat.
        out = jnp.dot(pooled, fcw_ref[...],
                      preferred_element_type=jnp.float32) + fcb_ref[...]
        out_ref[...] = out.astype(out_ref.dtype)

    return kernel


# --------------------------- parameter packing ----------------------------- #
def pack_textcnn_params(params, filter_sizes, seq_len):
    """Pack weights once into MXU/lane-friendly fused operands (wrapper side:
    in-kernel reshapes would materialize VMEM copies every invocation)."""
    emb_tbl = np.asarray(params["embedding"], np.float32)
    E = emb_tbl.shape[1]
    n_fs = len(filter_sizes)
    F = params["conv0_w"].shape[-1]
    output_dim = params["fc_w"].shape[-1]

    max_fs = max(filter_sizes)
    K = max_fs * E                                           # fused contraction
    L_pad = _round_up(seq_len - min(filter_sizes) + 1, 8)    # sublane aligned
    N_pad = _round_up(n_fs * F, 128)                         # lane-dense conv out
    OUT_pad = _round_up(output_dim, 128)                     # lane-dense logits

    w = np.zeros((K, N_pad), np.float32)
    b = np.zeros((1, N_pad), np.float32)
    mask = np.zeros((L_pad, N_pad), np.float32)
    for i, fs in enumerate(filter_sizes):
        wi = np.asarray(params[f"conv{i}_w"], np.float32).reshape(fs * E, F)
        w[: fs * E, i * F:(i + 1) * F] = wi
        b[0, i * F:(i + 1) * F] = np.asarray(params[f"conv{i}_b"]).reshape(F)
        mask[: seq_len - fs + 1, i * F:(i + 1) * F] = 1.0

    fcw = np.zeros((N_pad, OUT_pad), np.float32)
    fcw[: n_fs * F, :output_dim] = np.asarray(params["fc_w"], np.float32)
    fcb = np.zeros((1, OUT_pad), np.float32)
    fcb[0, :output_dim] = np.asarray(params["fc_b"]).reshape(output_dim)

    packed = dict(
        embedding=jnp.asarray(emb_tbl),
        conv_w=jnp.asarray(w), conv_b=jnp.asarray(b), mask=jnp.asarray(mask),
        fc_w=jnp.asarray(fcw), fc_b=jnp.asarray(fcb),
    )
    meta = dict(E=E, K=K, L_pad=L_pad, N_pad=N_pad, OUT_pad=OUT_pad,
                max_fs=max_fs, output_dim=output_dim, seq_len=seq_len)
    return packed, meta


def _vmem_budget(TB, S_pad, E, K, L_pad, N_pad, OUT_pad):
    """Scoped-VMEM request sized from the actual buffers (+ headroom)."""
    f32 = 4
    invariants = (K * N_pad + N_pad + L_pad * N_pad
                  + N_pad * OUT_pad + OUT_pad) * f32          # resident weights
    per_step = (TB * S_pad * E + TB * OUT_pad) * f32          # emb in + out
    body = (TB * L_pad * N_pad + 2 * TB * S_pad * E + TB * N_pad) * f32
    total = 2 * invariants + 2 * per_step + body              # double buffering
    total = int(total * 1.5) + (4 << 20)                      # compiler headroom
    # Clamp: >= 8 MiB, and <= 48 MiB so v7x's 64 MiB physical VMEM keeps slack.
    return min(max(total, 8 << 20), 48 << 20)


# ------------------------------ forward wrapper ---------------------------- #
def make_textcnn_forward(meta):
    E, K = meta["E"], meta["K"]
    L_pad, N_pad, OUT_pad = meta["L_pad"], meta["N_pad"], meta["OUT_pad"]
    max_fs, output_dim, S = meta["max_fs"], meta["output_dim"], meta["seq_len"]
    S_pad = L_pad + max_fs - 1

    def forward(text, packed):
        B = text.shape[0]

        # --- batch tile selection (static at trace time) ---
        # Target ~2048 matmul rows per grid step to amortize ~0.35us/step
        # overhead; for small/medium B use ~B/2 so there are >= 2 grid steps
        # (v7x megacore).  Never fall back to TB=B: pad the batch instead.
        target = _round_up(max(8, 2048 // L_pad), 8)
        half = _round_up(max(1, (B + 1) // 2), 8)
        TB = max(8, min(target, half, 512))
        B_pad = _round_up(max(B, TB), TB)
        grid = (B_pad // TB,)

        # Embedding gather + padding stay in the same jit as the kernel so the
        # embedded activations are produced once and streamed straight in.
        emb = jnp.take(packed["embedding"], text, axis=0)        # [B, S, E]
        emb = jnp.pad(emb, ((0, B_pad - B), (0, S_pad - S), (0, 0)))

        kernel = make_textcnn_kernel(TB, L_pad, N_pad, E, max_fs)
        vmem_limit = _vmem_budget(TB, S_pad, E, K, L_pad, N_pad, OUT_pad)

        out = pl.pallas_call(
            kernel,
            out_shape=jax.ShapeDtypeStruct((B_pad, OUT_pad), jnp.float32),
            grid=grid,
            in_specs=[
                pl.BlockSpec((TB, S_pad, E), lambda i: (i, 0, 0)),
                pl.BlockSpec((K, N_pad), lambda i: (0, 0)),
                pl.BlockSpec((1, N_pad), lambda i: (0, 0)),
                pl.BlockSpec((L_pad, N_pad), lambda i: (0, 0)),
                pl.BlockSpec((N_pad, OUT_pad), lambda i: (0, 0)),
                pl.BlockSpec((1, OUT_pad), lambda i: (0, 0)),
            ],
            out_specs=pl.BlockSpec((TB, OUT_pad), lambda i: (i, 0)),
            compiler_params=pltpu.CompilerParams(
                dimension_semantics=("parallel",),
                vmem_limit_bytes=vmem_limit),
        )(emb, packed["conv_w"], packed["conv_b"], packed["mask"],
          packed["fc_w"], packed["fc_b"])
        return out[:B, :output_dim]

    return jax.jit(forward)


# --------------------------- reference (pure JAX) -------------------------- #
def textcnn_reference(text, params, filter_sizes):
    hi = jax.lax.Precision.HIGHEST
    emb = jnp.take(params["embedding"], text, axis=0).astype(jnp.float32)
    B, S, E = emb.shape
    pooled = []
    for i, fs in enumerate(filter_sizes):
        W = params[f"conv{i}_w"]      # [fs, E, F]
        b = params[f"conv{i}_b"]      # [1, F]
        L = S - fs + 1
        acc = jnp.zeros((B, L, W.shape[-1]), jnp.float32)
        for k in range(fs):
            acc = acc + jnp.einsum("ble,ef->blf", emb[:, k:k + L, :], W[k],
                                   precision=hi)
        conved = jnp.maximum(acc + b, 0.0)
        pooled.append(jnp.max(conved, axis=1))
    cat = jnp.concatenate(pooled, axis=1)
    return jnp.dot(cat, params["fc_w"], precision=hi) + params["fc_b"]


# ------------------------------- main -------------------------------------- #
if __name__ == "__main__":
    # Small config consistent with TextCNN.__init__
    vocab_size = 50
    embedding_dim = 32
    n_filters = 8
    filter_sizes = (2, 3, 4)
    output_dim = 2
    pad_idx = 0
    batch, seq_len = 2, 16

    key = jax.random.PRNGKey(0)
    keys = jax.random.split(key, 2 + 2 * len(filter_sizes) + 2)

    params = {}
    emb_table = 0.1 * jax.random.normal(keys[0], (vocab_size, embedding_dim),
                                        dtype=jnp.float32)
    emb_table = emb_table.at[pad_idx].set(0.0)   # padding_idx row = 0
    params["embedding"] = emb_table

    for i, fs in enumerate(filter_sizes):
        # Conv2d weight [F, 1, fs, E] stored in layout [fs, E, F]
        params[f"conv{i}_w"] = 0.1 * jax.random.normal(
            keys[1 + 2 * i], (fs, embedding_dim, n_filters), dtype=jnp.float32)
        params[f"conv{i}_b"] = 0.1 * jax.random.normal(
            keys[2 + 2 * i], (1, n_filters), dtype=jnp.float32)

    in_features = len(filter_sizes) * n_filters
    # Linear weight [out, in] stored transposed as [in, out]
    params["fc_w"] = 0.1 * jax.random.normal(
        keys[-2], (in_features, output_dim), dtype=jnp.float32)
    params["fc_b"] = 0.1 * jax.random.normal(
        keys[-1], (1, output_dim), dtype=jnp.float32)

    text = jax.random.randint(jax.random.PRNGKey(42), (batch, seq_len),
                              0, vocab_size, dtype=jnp.int32)

    packed, meta = pack_textcnn_params(params, filter_sizes, seq_len)
    forward = make_textcnn_forward(meta)

    out = jax.block_until_ready(forward(text, packed))
    ref = jax.block_until_ready(textcnn_reference(text, params, filter_sizes))

    np.testing.assert_allclose(np.asarray(out), np.asarray(ref),
                               rtol=1e-5, atol=1e-5)
    print("KERNEL_OK")
</pallas_src>

<mosaic_0001>
module attributes {stable_mosaic.version = 11 : i64} {
  func.func @kernel(%arg0: i32, %arg1: memref<8x19x32xf32, #tpu.memory_space<vmem>>, %arg2: memref<128x128xf32, #tpu.memory_space<vmem>>, %arg3: memref<1x128xf32, #tpu.memory_space<vmem>>, %arg4: memref<16x128xf32, #tpu.memory_space<vmem>>, %arg5: memref<128x128xf32, #tpu.memory_space<vmem>>, %arg6: memref<1x128xf32, #tpu.memory_space<vmem>>, %arg7: memref<8x128xf32, #tpu.memory_space<vmem>>) attributes {dimension_semantics = [#tpu.dimension_semantics<parallel>], iteration_bounds = array<i64: 1>, scalar_prefetch = 0 : i64, scratch_operands = 0 : i64, tpu.core_type = #tpu.core_type<tc>, window_params = [{transform_indices = @transform_0, window_bounds = array<i64: 8, 19, 32>}, {pipeline_mode = #tpu.pipeline_mode<synchronous>, transform_indices = @transform_1, window_bounds = array<i64: 128, 128>}, {pipeline_mode = #tpu.pipeline_mode<synchronous>, transform_indices = @transform_2, window_bounds = array<i64: 1, 128>}, {pipeline_mode = #tpu.pipeline_mode<synchronous>, transform_indices = @transform_3, window_bounds = array<i64: 16, 128>}, {pipeline_mode = #tpu.pipeline_mode<synchronous>, transform_indices = @transform_4, window_bounds = array<i64: 128, 128>}, {pipeline_mode = #tpu.pipeline_mode<synchronous>, transform_indices = @transform_5, window_bounds = array<i64: 1, 128>}, {transform_indices = @transform_6, window_bounds = array<i64: 8, 128>}]} {
    %c0 = arith.constant 0 : index
    %c0_0 = arith.constant 0 : index
    %c0_1 = arith.constant 0 : index
    %0 = vector.load %arg1[%c0, %c0_0, %c0_1] : memref<8x19x32xf32, #tpu.memory_space<vmem>>, vector<8x19x32xf32>
    %cst = arith.constant 0.000000e+00 : f32
    %1 = vector.broadcast %cst : f32 to vector<128x128xf32>
    %2 = vector.extract_strided_slice %0 {offsets = [0, 0, 0], sizes = [8, 16, 32], strides = [1, 1, 1]} : vector<8x19x32xf32> to vector<8x16x32xf32>
    %3 = vector.shape_cast %2 : vector<8x16x32xf32> to vector<128x32xf32>
    %c0_2 = arith.constant 0 : index
    %c0_3 = arith.constant 0 : index
    %4 = vector.load %arg2[%c0_2, %c0_3] : memref<128x128xf32, #tpu.memory_space<vmem>>, vector<32x128xf32>
    %cst_4 = arith.constant dense<0.000000e+00> : vector<128x128xf32>
    %5 = tpu.matmul %3, %4, %cst_4 {dimension_numbers = #tpu.dot_dimension_numbers<[1], [0], [0], [1], [0, 0, 1, 1], [], []>} : vector<128x32xf32>, vector<32x128xf32>, vector<128x128xf32> -> vector<128x128xf32>
    %6 = arith.addf %1, %5 : vector<128x128xf32>
    %7 = vector.extract_strided_slice %0 {offsets = [0, 1, 0], sizes = [8, 16, 32], strides = [1, 1, 1]} : vector<8x19x32xf32> to vector<8x16x32xf32>
    %8 = vector.shape_cast %7 : vector<8x16x32xf32> to vector<128x32xf32>
    %c32 = arith.constant 32 : index
    %c0_5 = arith.constant 0 : index
    %9 = vector.load %arg2[%c32, %c0_5] : memref<128x128xf32, #tpu.memory_space<vmem>>, vector<32x128xf32>
    %cst_6 = arith.constant dense<0.000000e+00> : vector<128x128xf32>
    %10 = tpu.matmul %8, %9, %cst_6 {dimension_numbers = #tpu.dot_dimension_numbers<[1], [0], [0], [1], [0, 0, 1, 1], [], []>} : vector<128x32xf32>, vector<32x128xf32>, vector<128x128xf32> -> vector<128x128xf32>
    %11 = arith.addf %6, %10 : vector<128x128xf32>
    %12 = vector.extract_strided_slice %0 {offsets = [0, 2, 0], sizes = [8, 16, 32], strides = [1, 1, 1]} : vector<8x19x32xf32> to vector<8x16x32xf32>
    %13 = vector.shape_cast %12 : vector<8x16x32xf32> to vector<128x32xf32>
    %c64 = arith.constant 64 : index
    %c0_7 = arith.constant 0 : index
    %14 = vector.load %arg2[%c64, %c0_7] : memref<128x128xf32, #tpu.memory_space<vmem>>, vector<32x128xf32>
    %cst_8 = arith.constant dense<0.000000e+00> : vector<128x128xf32>
    %15 = tpu.matmul %13, %14, %cst_8 {dimension_numbers = #tpu.dot_dimension_numbers<[1], [0], [0], [1], [0, 0, 1, 1], [], []>} : vector<128x32xf32>, vector<32x128xf32>, vector<128x128xf32> -> vector<128x128xf32>
    %16 = arith.addf %11, %15 : vector<128x128xf32>
    %17 = vector.extract_strided_slice %0 {offsets = [0, 3, 0], sizes = [8, 16, 32], strides = [1, 1, 1]} : vector<8x19x32xf32> to vector<8x16x32xf32>
    %18 = vector.shape_cast %17 : vector<8x16x32xf32> to vector<128x32xf32>
    %c96 = arith.constant 96 : index
    %c0_9 = arith.constant 0 : index
    %19 = vector.load %arg2[%c96, %c0_9] : memref<128x128xf32, #tpu.memory_space<vmem>>, vector<32x128xf32>
    %cst_10 = arith.constant dense<0.000000e+00> : vector<128x128xf32>
    %20 = tpu.matmul %18, %19, %cst_10 {dimension_numbers = #tpu.dot_dimension_numbers<[1], [0], [0], [1], [0, 0, 1, 1], [], []>} : vector<128x32xf32>, vector<32x128xf32>, vector<128x128xf32> -> vector<128x128xf32>
    %21 = arith.addf %16, %20 : vector<128x128xf32>
    %c0_11 = arith.constant 0 : index
    %c0_12 = arith.constant 0 : index
    %22 = vector.load %arg3[%c0_11, %c0_12] : memref<1x128xf32, #tpu.memory_space<vmem>>, vector<1x128xf32>
    %23 = vector.broadcast %22 : vector<1x128xf32> to vector<128x128xf32>
    %24 = arith.addf %21, %23 : vector<128x128xf32>
    %cst_13 = arith.constant 0.000000e+00 : f32
    %25 = vector.broadcast %cst_13 : f32 to vector<128x128xf32>
    %26 = arith.maximumf %24, %25 : vector<128x128xf32>
    %27 = vector.shape_cast %26 : vector<128x128xf32> to vector<8x16x128xf32>
    %c0_14 = arith.constant 0 : index
    %c0_15 = arith.constant 0 : index
    %28 = vector.load %arg4[%c0_14, %c0_15] : memref<16x128xf32, #tpu.memory_space<vmem>>, vector<16x128xf32>
    %29 = vector.shape_cast %28 : vector<16x128xf32> to vector<1x16x128xf32>
    %30 = vector.broadcast %29 : vector<1x16x128xf32> to vector<8x16x128xf32>
    %31 = arith.mulf %27, %30 : vector<8x16x128xf32>
    %cst_16 = arith.constant dense<0xFF800000> : vector<8x128xf32>
    %32 = vector.multi_reduction <maximumf>, %31, %cst_16 [1] : vector<8x16x128xf32> to vector<8x128xf32>
    %c0_17 = arith.constant 0 : index
    %c0_18 = arith.constant 0 : index
    %33 = vector.load %arg5[%c0_17, %c0_18] : memref<128x128xf32, #tpu.memory_space<vmem>>, vector<128x128xf32>
    %cst_19 = arith.constant dense<0.000000e+00> : vector<8x128xf32>
    %34 = tpu.matmul %32, %33, %cst_19 {dimension_numbers = #tpu.dot_dimension_numbers<[1], [0], [0], [1], [0, 0, 1, 1], [], []>} : vector<8x128xf32>, vector<128x128xf32>, vector<8x128xf32> -> vector<8x128xf32>
    %c0_20 = arith.constant 0 : index
    %c0_21 = arith.constant 0 : index
    %35 = vector.load %arg6[%c0_20, %c0_21] : memref<1x128xf32, #tpu.memory_space<vmem>>, vector<1x128xf32>
    %36 = vector.broadcast %35 : vector<1x128xf32> to vector<8x128xf32>
    %37 = arith.addf %34, %36 : vector<8x128xf32>
    %c0_22 = arith.constant 0 : index
    %c0_23 = arith.constant 0 : index
    %38 = vector.load %arg7[%c0_22, %c0_23] : memref<8x128xf32, #tpu.memory_space<vmem>>, vector<8x128xf32>
    tpu.vector_store %arg7[%c0_22, %c0_23], %37 {strides = array<i32>} : memref<8x128xf32, #tpu.memory_space<vmem>>, vector<8x128xf32>,
    return
  }
  func.func @transform_0(%arg0: i32) -> (i32, i32, i32) {
    %c0_i32 = arith.constant 0 : i32
    %c0_i32_0 = arith.constant 0 : i32
    %c0_i32_1 = arith.constant 0 : i32
    return %arg0, %c0_i32, %c0_i32_0 : i32, i32, i32
  }
  func.func @transform_1(%arg0: i32) -> (i32, i32) {
    %c0_i32 = arith.constant 0 : i32
    %c0_i32_0 = arith.constant 0 : i32
    %c0_i32_1 = arith.constant 0 : i32
    return %c0_i32, %c0_i32_0 : i32, i32
  }
  func.func @transform_2(%arg0: i32) -> (i32, i32) {
    %c0_i32 = arith.constant 0 : i32
    %c0_i32_0 = arith.constant 0 : i32
    %c0_i32_1 = arith.constant 0 : i32
    return %c0_i32, %c0_i32_0 : i32, i32
  }
  func.func @transform_3(%arg0: i32) -> (i32, i32) {
    %c0_i32 = arith.constant 0 : i32
    %c0_i32_0 = arith.constant 0 : i32
    %c0_i32_1 = arith.constant 0 : i32
    return %c0_i32, %c0_i32_0 : i32, i32
  }
  func.func @transform_4(%arg0: i32) -> (i32, i32) {
    %c0_i32 = arith.constant 0 : i32
    %c0_i32_0 = arith.constant 0 : i32
    %c0_i32_1 = arith.constant 0 : i32
    return %c0_i32, %c0_i32_0 : i32, i32
  }
  func.func @transform_5(%arg0: i32) -> (i32, i32) {
    %c0_i32 = arith.constant 0 : i32
    %c0_i32_0 = arith.constant 0 : i32
    %c0_i32_1 = arith.constant 0 : i32
    return %c0_i32, %c0_i32_0 : i32, i32
  }
  func.func @transform_6(%arg0: i32) -> (i32, i32) {
    %c0_i32 = arith.constant 0 : i32
    %c0_i32_0 = arith.constant 0 : i32
    return %arg0, %c0_i32 : i32, i32
  }
}

</mosaic_0001>

<bundles_post_ra>
// kernel: forward.1
= control target key start
LH: loop header
LB: loop body
LE: loop exit
PB: predicated region body
PF: predicated region fallthrough
CT: control target
= control target key end

     0   :  { %vm75_vm0 = vcmask 1046528   ;;  %vm475_vm1 = vcmask 1045504   ;;  %vm120_vm2 = vcmask 261120   ;;  %vm713_vm3 = vcmask 1044480   ;;  %s2127_s1 = inlined_call_operand.vmem [shape: f32[128,128], index: 1, kind: input, shape index: {}]   ;;  %s2128_s0 = inlined_call_operand.vmem [shape: f32[8,19,32], index: 0, kind: input, shape index: {}]   ;;  %s2129_s4 = inlined_call_operand.vmem [shape: f32[128,128], index: 4, kind: input, shape index: {}]   ;;  %s2130_s2 = inlined_call_operand.vmem [shape: f32[1,128], index: 2, kind: input, shape index: {}]   ;;  %s2131_s3 = inlined_call_operand.vmem [shape: f32[16,128], index: 3, kind: input, shape index: {}]   ;;  %s2132_s5 = inlined_call_operand.vmem [shape: f32[1,128], index: 5, kind: input, shape index: {}]   ;;  %s2133_s6 = inlined_call_operand.vmem [shape: f32[8,128], index: 6, kind: output, shape index: {}]  }
   0x1   :  { %v116_v0 = vld [vmem:[%s2127_s1 + $0x20] sm:$0xff]  ;;  %v117_v1 = vld [vmem:[%s2127_s1 + $0x28] sm:$0xff]  ;;  %v118_v5 = vld [vmem:[%s2127_s1 + $0x30] sm:$0xff]  ;;  %vm1619_vm4 = vmmov 0   ;;  %vm1095_vm5 = vcmask 1041409   ;;  %vm1097_vm6 = vcmask 1042434  }
   0x2   :  { %v516_v2 = vld [vmem:[%s2127_s1 + $0x40] sm:$0xff]  ;;  %v1511_v3 = vpack.c.bf16 %v117_v1, %v116_v0  ;;  %v517_v4 = vld [vmem:[%s2127_s1 + $0x48] sm:$0xff]  ;;  %v119_v6 = vld [vmem:[%s2127_s1 + $0x38] sm:$0xff]  ;;  %vm1099_vm7 = vcmask 1043459   ;;  %vm1101_vm8 = vcmask 1044484   ;;  %vm1103_vm9 = vcmask 1045509  }
   0x3   :  { %v1527_v7 = vpack.c.bf16 %v517_v4, %v516_v2  ;;  %v1515_v8 = vpack.c.bf16 %v119_v6, %v118_v5  ;;  %v518_v9 = vld [vmem:[%s2127_s1 + $0x50] sm:$0xff]  ;;  %v519_v10 = vld [vmem:[%s2127_s1 + $0x58] sm:$0xff]  ;;  %v1683_v11 = vld [vmem:[%s2128_s0] sm:$0xff]  ;;  %vm1105_vm10 = vcmask 1046534   ;;  %vm1107_vm11 = vcmask 1047559  }
   0x4   :  { %1512 = vmatprep.subr.bf16.mxu1 %v1511_v3  ;;  %v1531_v12 = vpack.c.bf16 %v519_v10, %v518_v9  ;;  %v1688_v13 = vld [vmem:[%s2128_s0 + $0x8] sm:$0xff]  ;;  %v76_v14 = vrot.slane %v1683_v11, 1  ;;  %v476_v15 = vrot.slane %v1683_v11, 2  ;;  %v1695_v16 = vld [vmem:[%s2128_s0 + $0x10] sm:$0x7]  ;;  %v47_v17 = vld [vmem:[%s2127_s1] sm:$0xff] }
   0x5   :  { %1528 = vmatprep.subr.bf16.mxu0 %v1527_v7  ;;  %1514 = vmatpush3.bf16.msra.mxu1 %v1511_v3  ;;  %v77_v18 = vrot.slane %v1688_v13, 1  ;;  %v477_v19 = vrot.slane %v1688_v13, 2  ;;  %v79_v20 = vrot.slane %v1695_v16, 1  ;;  %v48_v21 = vld [vmem:[%s2127_s1 + $0x8] sm:$0xff]  ;;  %v754_v22 = vld [vmem:[%s2127_s1 + $0x60] sm:$0xff]  ;;  %v479_v24 = vrot.slane %v1695_v16, 2 }
   0x6   :  { %1530 = vmatpush3.bf16.msra.mxu0 %v1527_v7  ;;  %1516 = vmatprep.subr.bf16.mxu1 %v1515_v8  ;;  %v1519_v23 = vpack.c.bf16 %v48_v21, %v47_v17  ;;  %v755_v25 = vld [vmem:[%s2127_s1 + $0x68] sm:$0xff]  ;;  %v1716_v26 = vld [vmem:[%s2128_s0 + $0x18] sm:$0xff]  ;;  %v1721_v27 = vld [vmem:[%s2128_s0 + $0x20] sm:$0xff] }
   0x7   :  { %1532 = vmatprep.subr.bf16.mxu0 %v1531_v12  ;;  %v78_v28 = vsel %vm75_vm0, %v76_v14, %v77_v18  ;;  %v478_v29 = vsel %vm475_vm1, %v476_v15, %v477_v19  ;;  %v1535_v30 = vpack.c.bf16 %v755_v25, %v754_v22  ;;  %v1728_v31 = vld [vmem:[%s2128_s0 + $0x28] sm:$0x7]  ;;  %v1733_v32 = vld [vmem:[%s2128_s0 + $0x30] sm:$0xff]  ;;  %v1738_v33 = vld [vmem:[%s2128_s0 + $0x38] sm:$0xff]  ;;  %v81_v34 = vrot.slane %v1716_v26, 1 }
   0x8   :  { %1356 = vmatprep.mubr.msk.f32.mxu1 %vm120_vm2, %v78_v28  ;;  %1420 = vmatprep.mubr.msk.f32.mxu0 %vm120_vm2, %v478_v29  ;;  %v82_v35 = vrot.slane %v1721_v27, 1  ;;  %v481_v36 = vrot.slane %v1716_v26, 2  ;;  %v80_v37 = vsel %vm75_vm0, %v77_v18, %v79_v20  ;;  %v482_v38 = vrot.slane %v1721_v27, 2  ;;  %v1752_v41 = vld [vmem:[%s2128_s0 + $0x40] sm:$0x7]  ;;  %v1763_v48 = vld [vmem:[%s2128_s0 + $0x48] sm:$0xff] }
   0x9   :  { %1518 = vmatpush3.bf16.msra.mxu1 %v1515_v8  ;;  %v84_v39 = vrot.slane %v1728_v31, 1  ;;  %v484_v40 = vrot.slane %v1728_v31, 2  ;;  %v480_v42 = vsel %vm475_vm1, %v477_v19, %v479_v24  ;;  %v86_v43 = vrot.slane %v1733_v32, 1  ;;  %v1768_v49 = vld [vmem:[%s2128_s0 + $0x50] sm:$0xff]  ;;  %v1779_v54 = vld [vmem:[%s2128_s0 + $0x58] sm:$0x7] }
   0xa   :  { %1534 = vmatpush3.bf16.msra.mxu0 %v1531_v12  ;;  %1520 = vmatprep.subr.bf16.mxu1 %v1519_v23  ;;  %v87_v44 = vrot.slane %v1738_v33, 1  ;;  %v83_v45 = vsel %vm75_vm0, %v81_v34, %v82_v35  ;;  %v486_v46 = vrot.slane %v1733_v32, 2  ;;  %v487_v47 = vrot.slane %v1738_v33, 2  ;;  %v49_v55 = vld [vmem:[%s2127_s1 + $0x10] sm:$0xff]  ;;  %v50_v60 = vld [vmem:[%s2127_s1 + $0x18] sm:$0xff]  ;;  %v1805_v2 = vld [vmem:[%s2128_s0 + $0x60] sm:$0xff] }
   0xb   :  { %1536 = vmatprep.subr.bf16.mxu0 %v1535_v30  ;;  %v483_v50 = vsel %vm475_vm1, %v481_v36, %v482_v38  ;;  %v89_v51 = vrot.slane %v1752_v41, 1  ;;  %v85_v52 = vsel %vm75_vm0, %v82_v35, %v84_v39  ;;  %v485_v53 = vsel %vm475_vm1, %v482_v38, %v484_v40  ;;  %v756_v61 = vld [vmem:[%s2127_s1 + $0x70] sm:$0xff]  ;;  %v757_v62 = vld [vmem:[%s2127_s1 + $0x78] sm:$0xff]  ;;  %v1810_v3 = vld [vmem:[%s2128_s0 + $0x68] sm:$0xff] }
   0xc   :  { %1357 = vmatmul.mubr.msk.f32.vlgmr.msra.gmra.mrb[0].mxu1 %vm120_vm2, %v80_v37  ;;  %v88_v56 = vsel %vm75_vm0, %v86_v43, %v87_v44  ;;  %v489_v57 = vrot.slane %v1752_v41, 2  ;;  %v91_v58 = vrot.slane %v1763_v48, 1  ;;  %v92_v59 = vrot.slane %v1768_v49, 1  ;;  %v1826_v15 = vld [vmem:[%s2128_s0 + $0x70] sm:$0x7]  ;;  %v1834_v20 = vld [vmem:[%s2128_s0 + $0x78] sm:$0xff] }
   0xd   :  { %1421 = vmatmul.mubr.msk.f32.vlgmr.msra.gmra.mrb[0].mxu0 %vm120_vm2, %v480_v42  ;;  %1522 = vmatpush3.bf16.msra.mxu1 %v1519_v23  ;;  %v488_v63 = vsel %vm475_vm1, %v486_v46, %v487_v47  ;;  %v491_v0 = vrot.slane %v1763_v48, 2  ;;  %v492_v1 = vrot.slane %v1768_v49, 2  ;;  %v90_v4 = vsel %vm75_vm0, %v87_v44, %v89_v51  ;;  %v1839_v21 = vld [vmem:[%s2128_s0 + $0x80] sm:$0xff]  ;;  %v1855_v34 = vld [vmem:[%s2128_s0 + $0x88] sm:$0x7]  ;;  %v1863_v38 = vld [vmem:[%s2128_s0 + $0x90] sm:$0xff] }
   0xe   :  { %1538 = vmatpush3.bf16.msra.mxu0 %v1535_v30  ;;  %1359 = vmatprep.mubr.msk.f32.mxu1 %vm120_vm2, %v83_v45  ;;  %v94_v5 = vrot.slane %v1779_v54, 1  ;;  %v494_v6 = vrot.slane %v1779_v54, 2  ;;  %v1523_v7 = vpack.c.bf16 %v50_v60, %v49_v55  ;;  %v1539_v8 = vpack.c.bf16 %v757_v62, %v756_v61  ;;  %v1868_v39 = vld [vmem:[%s2128_s0 + $0x98] sm:$0xff]  ;;  %v1892_v55 = vld [vmem:[%s2128_s0 + $0xa8] sm:$0xff] }
   0xf   :  { %1423 = vmatprep.mubr.msk.f32.mxu0 %vm120_vm2, %v483_v50  ;;  %v490_v9 = vsel %vm475_vm1, %v487_v47, %v489_v57  ;;  %v93_v10 = vsel %vm75_vm0, %v91_v58, %v92_v59  ;;  %v96_v12 = vrot.slane %v1805_v2, 1  ;;  %v97_v14 = vrot.slane %v1810_v3, 1  ;;  %v1884_v50 = vld [vmem:[%s2128_s0 + $0xa0] sm:$0x7] }
  0x10   :  { %1360 = vmatmul.mubr.msk.f32.gmra.mrb[2].mxu1 %vm120_vm2, %v85_v52  ;;  %v493_v17 = vsel %vm475_vm1, %v491_v0, %v492_v1  ;;  %v496_v18 = vrot.slane %v1805_v2, 2  ;;  %v497_v19 = vrot.slane %v1810_v3, 2  ;;  %1524 = vmatprep.subr.bf16.mxu1 %v1523_v7  ;;  %v95_v22 = vsel %vm75_vm0, %v92_v59, %v94_v5  ;;  %v1913_v0 = vld [vmem:[%s2128_s0 + $0xb8] sm:$0x7] }
  0x11   :  { %1424 = vmatmul.mubr.msk.f32.gmra.mrb[2].mxu0 %vm120_vm2, %v485_v53  ;;  %1362 = vmatprep.mubr.msk.f32.mxu1 %vm120_vm2, %v88_v56  ;;  %v495_v23 = vsel %vm475_vm1, %v492_v1, %v494_v6  ;;  %v99_v24 = vrot.slane %v1826_v15, 1  ;;  %v98_v25 = vsel %vm75_vm0, %v96_v12, %v97_v14  ;;  %v499_v28 = vrot.slane %v1826_v15, 2  ;;  %v1897_v56 = vld [vmem:[%s2128_s0 + $0xb0] sm:$0xff] }
  0x12   :  { %1426 = vmatprep.mubr.msk.f32.mxu0 %vm120_vm2, %v488_v63  ;;  %1540 = vmatprep.subr.bf16.mxu0 %v1539_v8  ;;  %v101_v29 = vrot.slane %v1834_v20, 1  ;;  %v102_v30 = vrot.slane %v1839_v21, 1  ;;  %v498_v35 = vsel %vm475_vm1, %v496_v18, %v497_v19  ;;  %v501_v36 = vrot.slane %v1834_v20, 2 }
  0x13   :  { %1542 = vmatpush3.bf16.msra.mxu0 %v1539_v8  ;;  %1526 = vmatpush3.bf16.msra.mxu1 %v1523_v7  ;;  %v502_v37 = vrot.slane %v1839_v21, 2  ;;  %v100_v40 = vsel %vm75_vm0, %v97_v14, %v99_v24  ;;  %v104_v42 = vrot.slane %v1855_v34, 1  ;;  %v504_v43 = vrot.slane %v1855_v34, 2 }
  0x14   :  { %1363 = vmatmul.mubr.msk.f32.gmra.mrb[4].mxu1 %vm120_vm2, %v90_v4  ;;  %v500_v44 = vsel %vm475_vm1, %v497_v19, %v499_v28  ;;  %v103_v45 = vsel %vm75_vm0, %v101_v29, %v102_v30  ;;  %v106_v46 = vrot.slane %v1863_v38, 1  ;;  %v107_v47 = vrot.slane %v1868_v39, 1 }
  0x15   :  { %1427 = vmatmul.mubr.msk.f32.gmra.mrb[4].mxu0 %vm120_vm2, %v490_v9  ;;  %1365 = vmatprep.mubr.msk.f32.mxu1 %vm120_vm2, %v93_v10  ;;  %v503_v51 = vsel %vm475_vm1, %v501_v36, %v502_v37  ;;  %v506_v52 = vrot.slane %v1863_v38, 2  ;;  %v507_v53 = vrot.slane %v1868_v39, 2  ;;  %v105_v57 = vsel %vm75_vm0, %v102_v30, %v104_v42 }
  0x16   :  { %1429 = vmatprep.mubr.msk.f32.mxu0 %vm120_vm2, %v493_v17  ;;  %v505_v58 = vsel %vm475_vm1, %v502_v37, %v504_v43  ;;  %v109_v59 = vrot.slane %v1884_v50, 1  ;;  %v108_v60 = vsel %vm75_vm0, %v106_v46, %v107_v47  ;;  %v509_v61 = vrot.slane %v1884_v50, 2 }
  0x17   :  { %v111_v62 = vrot.slane %v1892_v55, 1  ;;  %v112_v63 = vrot.slane %v1897_v56, 1  ;;  %v508_v1 = vsel %vm475_vm1, %v506_v52, %v507_v53  ;;  %v511_v4 = vrot.slane %v1892_v55, 2 }
  0x18   :  { %1366 = vmatmul.mubr.msk.f32.gmra.mrb[6].mxu1 %vm120_vm2, %v95_v22  ;;  %v512_v5 = vrot.slane %v1897_v56, 2  ;;  %v110_v6 = vsel %vm75_vm0, %v107_v47, %v109_v59  ;;  %v114_v7 = vrot.slane %v1913_v0, 1  ;;  %v510_v8 = vsel %vm475_vm1, %v507_v53, %v509_v61  ;;  %v1068_v59 = vld [vmem:[%s2129_s4 + $0x20] sm:$0xff] }
  0x19   :  { %1430 = vmatmul.mubr.msk.f32.gmra.mrb[6].mxu0 %vm120_vm2, %v495_v23  ;;  %1368 = vmatprep.mubr.msk.f32.mxu1 %vm120_vm2, %v98_v25  ;;  %v113_v9 = vsel %vm75_vm0, %v111_v62, %v112_v63  ;;  %v514_v10 = vrot.slane %v1913_v0, 2  ;;  %v714_v14 = vrot.slane %v1683_v11, 3  ;;  %v715_v17 = vrot.slane %v1688_v13, 3  ;;  %v1070_v62 = vld [vmem:[%s2129_s4 + $0x30] sm:$0xff] }
  0x1a   :  { %1432 = vmatprep.mubr.msk.f32.mxu0 %vm120_vm2, %v498_v35  ;;  %v513_v12 = vsel %vm475_vm1, %v511_v4, %v512_v5  ;;  %v115_v18 = vsel %vm75_vm0, %v112_v63, %v114_v7  ;;  %v717_v19 = vrot.slane %v1695_v16, 3  ;;  %v719_v24 = vrot.slane %v1716_v26, 3  ;;  %v1071_v63 = vld [vmem:[%s2129_s4 + $0x38] sm:$0xff]  ;;  %v1073_v4 = vld [vmem:[%s2129_s4 + $0x48] sm:$0xff] }
  0x1b   :  { %v515_v22 = vsel %vm475_vm1, %v512_v5, %v514_v10  ;;  %v716_v23 = vsel %vm713_vm3, %v714_v14, %v715_v17  ;;  %v720_v25 = vrot.slane %v1721_v27, 3  ;;  %v722_v28 = vrot.slane %v1728_v31, 3  ;;  %v1075_v7 = vld [vmem:[%s2129_s4 + $0x58] sm:$0xff]  ;;  %v1077_v10 = vld [vmem:[%s2129_s4 + $0x68] sm:$0xff]  ;;  %v1078_v14 = vld [vmem:[%s2129_s4 + $0x70] sm:$0xff] }
  0x1c   :  { %1369 = vmatmul.mubr.msk.f32.gmra.mrb[8].mxu1 %vm120_vm2, %v100_v40  ;;  %v718_v16 = vsel %vm713_vm3, %v715_v17, %v717_v19  ;;  %v724_v30 = vrot.slane %v1733_v32, 3  ;;  %v725_v35 = vrot.slane %v1738_v33, 3  ;;  %v727_v31 = vrot.slane %v1752_v41, 3  ;;  %v1079_v17 = vld [vmem:[%s2129_s4 + $0x78] sm:$0xff] }
  0x1d   :  { %1433 = vmatmul.mubr.msk.f32.gmra.mrb[8].mxu0 %vm120_vm2, %v500_v44  ;;  %1371 = vmatprep.mubr.msk.f32.mxu1 %vm120_vm2, %v103_v45  ;;  %v721_v29 = vsel %vm713_vm3, %v719_v24, %v720_v25  ;;  %v729_v37 = vrot.slane %v1763_v48, 3  ;;  %v730_v40 = vrot.slane %v1768_v49, 3  ;;  %v734_v42 = vrot.slane %v1805_v2, 3  ;;  %v2075_v24 = vld [vmem:[%s2130_s2] ss:$0 sm:$0xff] }
  0x1e   :  { %1435 = vmatprep.mubr.msk.f32.mxu0 %vm120_vm2, %v503_v51  ;;  %v726_v36 = vsel %vm713_vm3, %v724_v30, %v725_v35  ;;  %v735_v43 = vrot.slane %v1810_v3, 3  ;;  %v739_v44 = vrot.slane %v1834_v20, 3  ;;  %v740_v45 = vrot.slane %v1839_v21, 3 }
  0x1f   :  { %v731_v41 = vsel %vm713_vm3, %v729_v37, %v730_v40  ;;  %v744_v46 = vrot.slane %v1863_v38, 3  ;;  %v745_v47 = vrot.slane %v1868_v39, 3  ;;  %v749_v51 = vrot.slane %v1892_v55, 3 }
  0x20   :  { %1372 = vmatmul.mubr.msk.f32.gmra.mrb[10].mxu1 %vm120_vm2, %v105_v57  ;;  %v750_v52 = vrot.slane %v1897_v56, 3  ;;  %v1618_v57 = vmov 0.0|0.0   ;;  %v1620_v19 = vmov 0.0  }
  0x21   :  { %1436 = vmatmul.mubr.msk.f32.gmra.mrb[10].mxu0 %vm120_vm2, %v505_v58  ;;  %1374 = vmatprep.mubr.msk.f32.mxu1 %vm120_vm2, %v108_v60  ;;  %v1069_v60 = vld [vmem:[%s2129_s4 + $0x28] sm:$0xff] }
  0x22   :  { %1438 = vmatprep.mubr.msk.f32.mxu0 %vm120_vm2, %v508_v1  ;;  %1543 = vmatprep.subr.bf16.mxu1 %v1618_v57  ;;  %v1550_v61 = vpack.c.bf16 %v1069_v60, %v1068_v59  ;;  %v1072_v1 = vld [vmem:[%s2129_s4 + $0x40] sm:$0xff] }
  0x23   :  { %v1556_v5 = vpack.c.bf16 %v1073_v4, %v1072_v1 }
  0x24   :  { %1375 = vmatmul.mubr.msk.f32.gmra.mrb[12].mxu1 %vm120_vm2, %v110_v6  ;;  %v1074_v6 = vld [vmem:[%s2129_s4 + $0x50] sm:$0xff] }
  0x25   :  { %1439 = vmatmul.mubr.msk.f32.gmra.mrb[12].mxu0 %vm120_vm2, %v510_v8  ;;  %1377 = vmatprep.mubr.msk.f32.mxu1 %vm120_vm2, %v113_v9  ;;  %v1559_v8 = vpack.c.bf16 %v1075_v7, %v1074_v6  ;;  %v1076_v9 = vld [vmem:[%s2129_s4 + $0x60] sm:$0xff] }
  0x26   :  { %1441 = vmatprep.mubr.msk.f32.mxu0 %vm120_vm2, %v513_v12  ;;  %v1562_v12 = vpack.c.bf16 %v1077_v10, %v1076_v9 }
  0x28   :  { %1378 = vmatmul.mubr.msk.f32.gmra.mrb[14].mxu1 %vm120_vm2, %v115_v18  ;;  %v1565_v18 = vpack.c.bf16 %v1079_v17, %v1078_v14 }
  0x29   :  { %1442 = vmatmul.mubr.msk.f32.gmra.mrb[14].mxu0 %vm120_vm2, %v515_v22  ;;  %1388 = vmatprep.mubr.msk.f32.mxu1 %vm120_vm2, %v1683_v11  ;;  %v723_v11 = vsel %vm713_vm3, %v720_v25, %v722_v28 }
  0x2a   :  { %1452 = vmatprep.mubr.msk.f32.mxu0 %vm120_vm2, %v716_v23 }
  0x2c   :  { %1389 = vmatmul.mubr.msk.f32.vlgmr.msra.gmra.mrb[0].mxu1 %vm120_vm2, %v1688_v13  ;;  %v728_v13 = vsel %vm713_vm3, %v725_v35, %v727_v31 }
  0x2d   :  { %1453 = vmatmul.mubr.msk.f32.vlgmr.msra.gmra.mrb[0].mxu0 %vm120_vm2, %v718_v16  ;;  %1391 = vmatprep.mubr.msk.f32.mxu1 %vm120_vm2, %v1716_v26  ;;  %v732_v26 = vrot.slane %v1779_v54, 3  ;;  %v736_v54 = vsel %vm713_vm3, %v734_v42, %v735_v43 }
  0x2e   :  { %1455 = vmatprep.mubr.msk.f32.mxu0 %vm120_vm2, %v721_v29 }
  0x30   :  { %1392 = vmatmul.mubr.msk.f32.gmra.mrb[2].mxu1 %vm120_vm2, %v1721_v27  ;;  %v733_v27 = vsel %vm713_vm3, %v730_v40, %v732_v26 }
  0x31   :  { %1456 = vmatmul.mubr.msk.f32.gmra.mrb[2].mxu0 %vm120_vm2, %v723_v11  ;;  %1394 = vmatprep.mubr.msk.f32.mxu1 %vm120_vm2, %v1733_v32  ;;  %v737_v32 = vrot.slane %v1826_v15, 3  ;;  %v741_v15 = vsel %vm713_vm3, %v739_v44, %v740_v45  ;;  %v2081_v11 = vld [vmem:[%s2131_s3 + $0x8] sm:$0xff] }
  0x32   :  { %1458 = vmatprep.mubr.msk.f32.mxu0 %vm120_vm2, %v726_v36 }
  0x34   :  { %1395 = vmatmul.mubr.msk.f32.gmra.mrb[4].mxu1 %vm120_vm2, %v1738_v33  ;;  %v738_v33 = vsel %vm713_vm3, %v735_v43, %v737_v32 }
  0x35   :  { %1459 = vmatmul.mubr.msk.f32.gmra.mrb[4].mxu0 %vm120_vm2, %v728_v13  ;;  %1397 = vmatprep.mubr.msk.f32.mxu1 %vm120_vm2, %v1763_v48  ;;  %v742_v48 = vrot.slane %v1855_v34, 3  ;;  %v746_v34 = vsel %vm713_vm3, %v744_v46, %v745_v47  ;;  %v2087_v13 = vld [vmem:[%s2131_s3] sm:$0xff] }
  0x36   :  { %1461 = vmatprep.mubr.msk.f32.mxu0 %vm120_vm2, %v731_v41 }
  0x38   :  { %1398 = vmatmul.mubr.msk.f32.gmra.mrb[6].mxu1 %vm120_vm2, %v1768_v49  ;;  %v743_v49 = vsel %vm713_vm3, %v740_v45, %v742_v48 }
  0x39   :  { %1462 = vmatmul.mubr.msk.f32.gmra.mrb[6].mxu0 %vm120_vm2, %v733_v27  ;;  %1400 = vmatprep.mubr.msk.f32.mxu1 %vm120_vm2, %v1805_v2  ;;  %v747_v2 = vrot.slane %v1884_v50, 3  ;;  %v751_v50 = vsel %vm713_vm3, %v749_v51, %v750_v52 }
  0x3a   :  { %1464 = vmatprep.mubr.msk.f32.mxu0 %vm120_vm2, %v736_v54 }
  0x3c   :  { %1401 = vmatmul.mubr.msk.f32.gmra.mrb[8].mxu1 %vm120_vm2, %v1810_v3  ;;  %v748_v3 = vsel %vm713_vm3, %v745_v47, %v747_v2 }
  0x3d   :  { %1465 = vmatmul.mubr.msk.f32.gmra.mrb[8].mxu0 %vm120_vm2, %v738_v33  ;;  %1403 = vmatprep.mubr.msk.f32.mxu1 %vm120_vm2, %v1834_v20  ;;  %v752_v20 = vrot.slane %v1913_v0, 3  ;;  %v1553_v0 = vpack.c.bf16 %v1071_v63, %v1070_v62 }
  0x3e   :  { %1467 = vmatprep.mubr.msk.f32.mxu0 %vm120_vm2, %v741_v15 }
  0x40   :  { %1404 = vmatmul.mubr.msk.f32.gmra.mrb[10].mxu1 %vm120_vm2, %v1839_v21  ;;  %v753_v21 = vsel %vm713_vm3, %v750_v52, %v752_v20 }
  0x41   :  { %1468 = vmatmul.mubr.msk.f32.gmra.mrb[10].mxu0 %vm120_vm2, %v743_v49  ;;  %1406 = vmatprep.mubr.msk.f32.mxu1 %vm120_vm2, %v1863_v38  ;;  %v1064_v38 = vld [vmem:[%s2129_s4] sm:$0xff] }
  0x42   :  { %1470 = vmatprep.mubr.msk.f32.mxu0 %vm120_vm2, %v746_v34 }
  0x44   :  { %1407 = vmatmul.mubr.msk.f32.gmra.mrb[12].mxu1 %vm120_vm2, %v1868_v39  ;;  %v1065_v39 = vld [vmem:[%s2129_s4 + $0x8] sm:$0xff] }
  0x45   :  { %1471 = vmatmul.mubr.msk.f32.gmra.mrb[12].mxu0 %vm120_vm2, %v748_v3  ;;  %1409 = vmatprep.mubr.msk.f32.mxu1 %vm120_vm2, %v1892_v55  ;;  %v1544_v53 = vpack.c.bf16 %v1065_v39, %v1064_v38  ;;  %v1066_v55 = vld [vmem:[%s2129_s4 + $0x10] sm:$0xff] }
  0x46   :  { %1473 = vmatprep.mubr.msk.f32.mxu0 %vm120_vm2, %v751_v50 }
  0x47   :  { %1545 = vmatpush3.bf16.msra.mxu1 %v1544_v53 }
  0x48   :  { %1410 = vmatmul.mubr.msk.f32.gmra.mrb[14].mxu1 %vm120_vm2, %v1897_v56  ;;  %1546 = vmatprep.subr.bf16.mxu1 %v1618_v57  ;;  %v1067_v56 = vld [vmem:[%s2129_s4 + $0x18] sm:$0xff] }
  0x49   :  { %1474 = vmatmul.mubr.msk.f32.gmra.mrb[14].mxu0 %vm120_vm2, %v753_v21  ;;  %v1547_v58 = vpack.c.bf16 %v1067_v56, %v1066_v55  ;;  %1508 = vmatprep.mubr.msk.f32.mxu1 %vm1619_vm4, %v1620_v19 }
  0x4b   :  { %1548 = vmatpush3.bf16.msra.mxu1 %v1547_v58 }
  0x4c   :  { %1549 = vmatprep.subr.bf16.mxu1 %v1618_v57 }
  0x4f   :  { %1551 = vmatpush3.bf16.msra.mxu1 %v1550_v61 }
  0x50   :  { %1552 = vmatprep.subr.bf16.mxu1 %v1618_v57 }
  0x53   :  { %1554 = vmatpush3.bf16.msra.mxu1 %v1553_v0 }
  0x54   :  { %1555 = vmatprep.subr.bf16.mxu1 %v1618_v57 }
  0x57   :  { %1557 = vmatpush3.bf16.msra.mxu1 %v1556_v5 }
  0x58   :  { %1558 = vmatprep.subr.bf16.mxu1 %v1618_v57 }
  0x5b   :  { %1560 = vmatpush3.bf16.msra.mxu1 %v1559_v8 }
  0x5c   :  { %1561 = vmatprep.subr.bf16.mxu1 %v1618_v57 }
  0x5f   :  { %1563 = vmatpush3.bf16.msra.mxu1 %v1562_v12 }
  0x60   :  { %1564 = vmatprep.subr.bf16.mxu1 %v1618_v57 }
  0x63   :  { %1566 = vmatpush3.bf16.msra.mxu1 %v1565_v18 }
  0xff   :  { %v1390_v22 = vpop.f32.mrb[0].mxu1 }
 0x100   :  { %v1454_v23 = vpop.f32.mrb[0].mxu0  ;;  %v396_v25 = vpop.f32.mrb[1].mxu1 }
 0x101   :  { %v1567_v16 = vadd.f32 %v1454_v23, %v1390_v22  ;;  %v856_v28 = vpop.f32.mrb[1].mxu0 }
 0x102   :  { %v1568_v29 = vadd.f32 %v856_v28, %v396_v25 }
 0x103   :  { %v959_v30 = vadd.f32 %v1567_v16, %v2075_v24  ;;  %v1393_v35 = vpop.f32.mrb[2].mxu1 }
 0x104   :  { %v958_v31 = vadd.f32 %v1568_v29, %v2075_v24  ;;  %v1457_v36 = vpop.f32.mrb[2].mxu0  ;;  %v406_v37 = vpop.f32.mrb[3].mxu1 }
 0x105   :  { %v975_v40 = vmax.f32 %v959_v30, 0.0  ;;  %v1569_v26 = vadd.f32 %v1457_v36, %v1393_v35  ;;  %v866_v41 = vpop.f32.mrb[3].mxu0 }
 0x106   :  { %v974_v42 = vmax.f32 %v958_v31, 0.0  ;;  %v1570_v43 = vadd.f32 %v866_v41, %v406_v37 }
 0x107   :  { %v993_v27 = vmul.f32 %v2081_v11, %v975_v40  ;;  %v961_v32 = vadd.f32 %v1569_v26, %v2075_v24  ;;  %v1396_v54 = vpop.f32.mrb[4].mxu1 }
 0x108   :  { %v992_v44 = vmul.f32 %v2087_v13, %v974_v42  ;;  %v960_v45 = vadd.f32 %v1570_v43, %v2075_v24  ;;  %v1460_v33 = vpop.f32.mrb[4].mxu0  ;;  %v416_v48 = vpop.f32.mrb[5].mxu1 }
 0x109   :  { %v977_v15 = vmax.f32 %v961_v32, 0.0  ;;  %v1571_v46 = vadd.f32 %v1460_v33, %v1396_v54  ;;  %v876_v47 = vpop.f32.mrb[5].mxu0 }
 0x10a   :  { %v1008_v49 = vmax.f32 %v992_v44, %v993_v27  ;;  %v976_v2 = vmax.f32 %v960_v45, 0.0  ;;  %v1572_v34 = vadd.f32 %v876_v47, %v416_v48 }
 0x10b   :  { %v995_v51 = vmul.f32 %v2081_v11, %v977_v15  ;;  %v963_v52 = vadd.f32 %v1571_v46, %v2075_v24  ;;  %v1399_v3 = vpop.f32.mrb[6].mxu1 }
 0x10c   :  { %v1009_v20 = vrot.slane %v1008_v49, 4  ;;  %v994_v50 = vmul.f32 %v2087_v13, %v976_v2  ;;  %v962_v21 = vadd.f32 %v1572_v34, %v2075_v24  ;;  %v1463_v38 = vpop.f32.mrb[6].mxu0  ;;  %v426_v39 = vpop.f32.mrb[7].mxu1 }
 0x10d   :  { %v979_v53 = vmax.f32 %v963_v52, 0.0  ;;  %v1573_v57 = vadd.f32 %v1463_v38, %v1399_v3  ;;  %v886_v55 = vpop.f32.mrb[7].mxu0 }
 0x10e   :  { %v1010_v56 = vmax.f32 %v1008_v49, %v1009_v20  ;;  %v1015_v58 = vmax.f32 %v994_v50, %v995_v51  ;;  %v978_v59 = vmax.f32 %v962_v21, 0.0  ;;  %v1574_v60 = vadd.f32 %v886_v55, %v426_v39 }
 0x10f   :  { %v997_v61 = vmul.f32 %v2081_v11, %v979_v53  ;;  %v965_v62 = vadd.f32 %v1573_v57, %v2075_v24  ;;  %v1402_v63 = vpop.f32.mrb[8].mxu1 }
 0x110   :  { %v1011_v0 = vrot.slane %v1010_v56, 2  ;;  %v1016_v1 = vrot.slane %v1015_v58, 4  ;;  %v996_v4 = vmul.f32 %v2087_v13, %v978_v59  ;;  %v964_v5 = vadd.f32 %v1574_v60, %v2075_v24  ;;  %v1466_v6 = vpop.f32.mrb[8].mxu0  ;;  %v436_v7 = vpop.f32.mrb[9].mxu1 }
 0x111   :  { %v981_v8 = vmax.f32 %v965_v62, 0.0  ;;  %v1575_v9 = vadd.f32 %v1466_v6, %v1402_v63  ;;  %v896_v10 = vpop.f32.mrb[9].mxu0 }
 0x112   :  { %v1012_v12 = vmax.f32 %v1010_v56, %v1011_v0  ;;  %v1017_v14 = vmax.f32 %v1015_v58, %v1016_v1  ;;  %v1022_v17 = vmax.f32 %v996_v4, %v997_v61  ;;  %v980_v18 = vmax.f32 %v964_v5, 0.0 }
 0x113   :  { %v999_v19 = vmul.f32 %v2081_v11, %v981_v8  ;;  %v967_v22 = vadd.f32 %v1575_v9, %v2075_v24  ;;  %v1576_v23 = vadd.f32 %v896_v10, %v436_v7  ;;  %v1405_v25 = vpop.f32.mrb[10].mxu1 }
 0x114   :  { %v1013_v16 = vrot.slane %v1012_v12, 1  ;;  %v1018_v28 = vrot.slane %v1017_v14, 2  ;;  %v1023_v29 = vrot.slane %v1022_v17, 4  ;;  %v998_v30 = vmul.f32 %v2087_v13, %v980_v18  ;;  %v1469_v35 = vpop.f32.mrb[10].mxu0  ;;  %v446_v31 = vpop.f32.mrb[11].mxu1 }
 0x115   :  { %v983_v36 = vmax.f32 %v967_v22, 0.0  ;;  %v966_v37 = vadd.f32 %v1576_v23, %v2075_v24  ;;  %v1577_v40 = vadd.f32 %v1469_v35, %v1405_v25  ;;  %v906_v26 = vpop.f32.mrb[11].mxu0 }
 0x116   :  { %v1019_v41 = vmax.f32 %v1017_v14, %v1018_v28  ;;  %v1024_v42 = vmax.f32 %v1022_v17, %v1023_v29  ;;  %v1029_v43 = vmax.f32 %v998_v30, %v999_v19  ;;  %v1578_v44 = vadd.f32 %v906_v26, %v446_v31 }
 0x117   :  { %v1001_v27 = vmul.f32 %v2081_v11, %v983_v36  ;;  %v982_v32 = vmax.f32 %v966_v37, 0.0  ;;  %v969_v54 = vadd.f32 %v1577_v40, %v2075_v24  ;;  %v1408_v45 = vpop.f32.mrb[12].mxu1  ;;  %v1014_v33 = vmax.f32 %v1012_v12, %v1013_v16 }
 0x118   :  { %v1020_v48 = vrot.slane %v1019_v41, 1  ;;  %v1025_v15 = vrot.slane %v1024_v42, 2  ;;  %v1030_v46 = vrot.slane %v1029_v43, 4  ;;  %v1472_v47 = vpop.f32.mrb[12].mxu0  ;;  %v456_v49 = vpop.f32.mrb[13].mxu1  ;;  %v968_v51 = vadd.f32 %v1578_v44, %v2075_v24 }
 0x119   :  { %v1000_v2 = vmul.f32 %v2087_v13, %v982_v32  ;;  %v985_v34 = vmax.f32 %v969_v54, 0.0  ;;  %v1579_v52 = vadd.f32 %v1472_v47, %v1408_v45  ;;  %v916_v3 = vpop.f32.mrb[13].mxu0 }
 0x11a   :  { %v1021_v20 = vmax.f32 %v1019_v41, %v1020_v48  ;;  %v1026_v50 = vmax.f32 %v1024_v42, %v1025_v15  ;;  %v1031_v21 = vmax.f32 %v1029_v43, %v1030_v46  ;;  %v1580_v38 = vadd.f32 %v916_v3, %v456_v49 }
 0x11b   :  { %v1036_v39 = vmax.f32 %v1000_v2, %v1001_v27  ;;  %v1003_v53 = vmul.f32 %v2081_v11, %v985_v34  ;;  %v984_v57 = vmax.f32 %v968_v51, 0.0  ;;  %v971_v55 = vadd.f32 %v1579_v52, %v2075_v24  ;;  %v1411_v56 = vpop.f32.mrb[14].mxu1 }
 0x11c   :  { %v1096_v58 = vsel %vm1095_vm5, %v1021_v20, %v1014_v33  ;;  %v1027_v59 = vrot.slane %v1026_v50, 1  ;;  %v1032_v60 = vrot.slane %v1031_v21, 2  ;;  %v970_v61 = vadd.f32 %v1580_v38, %v2075_v24  ;;  %v1475_v62 = vpop.f32.mrb[14].mxu0  ;;  %v466_v63 = vpop.f32.mrb[15].mxu1 }
 0x11d   :  { %v1037_v0 = vrot.slane %v1036_v39, 4  ;;  %v1002_v1 = vmul.f32 %v2087_v13, %v984_v57  ;;  %v987_v4 = vmax.f32 %v971_v55, 0.0  ;;  %v1581_v5 = vadd.f32 %v1475_v62, %v1411_v56  ;;  %v926_v6 = vpop.f32.mrb[15].mxu0 }
 0x11e   :  { %v1028_v7 = vmax.f32 %v1026_v50, %v1027_v59  ;;  %v1033_v8 = vmax.f32 %v1031_v21, %v1032_v60  ;;  %v986_v9 = vmax.f32 %v970_v61, 0.0  ;;  %v1582_v10 = vadd.f32 %v926_v6, %v466_v63  ;;  %v1250_v21 = vld [vmem:[%s2132_s5] ss:$0 sm:$0xff] }
 0x11f   :  { %v1038_v12 = vmax.f32 %v1036_v39, %v1037_v0  ;;  %v1043_v14 = vmax.f32 %v1002_v1, %v1003_v53  ;;  %v1005_v17 = vmul.f32 %v2081_v11, %v987_v4  ;;  %v973_v18 = vadd.f32 %v1581_v5, %v2075_v24 }
 0x120   :  { %v1034_v19 = vrot.slane %v1033_v8, 1  ;;  %v1004_v22 = vmul.f32 %v2087_v13, %v986_v9  ;;  %v972_v23 = vadd.f32 %v1582_v10, %v2075_v24  ;;  %v1098_v25 = vsel %vm1097_vm6, %v1028_v7, %v1096_v58 }
 0x121   :  { %v1039_v16 = vrot.slane %v1038_v12, 2  ;;  %v1044_v28 = vrot.slane %v1043_v14, 4  ;;  %v989_v29 = vmax.f32 %v973_v18, 0.0 }
 0x122   :  { %v1035_v30 = vmax.f32 %v1033_v8, %v1034_v19  ;;  %v1050_v35 = vmax.f32 %v1004_v22, %v1005_v17  ;;  %v988_v31 = vmax.f32 %v972_v23, 0.0 }
 0x123   :  { %v1040_v36 = vmax.f32 %v1038_v12, %v1039_v16  ;;  %v1045_v37 = vmax.f32 %v1043_v14, %v1044_v28  ;;  %v1007_v40 = vmul.f32 %v2081_v11, %v989_v29 }
 0x124   :  { %v1051_v26 = vrot.slane %v1050_v35, 4  ;;  %v1006_v41 = vmul.f32 %v2087_v13, %v988_v31  ;;  %v1100_v42 = vsel %vm1099_vm7, %v1035_v30, %v1098_v25 }
 0x125   :  { %v1041_v43 = vrot.slane %v1040_v36, 1  ;;  %v1046_v27 = vrot.slane %v1045_v37, 2 }
 0x126   :  { %v1052_v24 = vmax.f32 %v1050_v35, %v1051_v26  ;;  %v1057_v32 = vmax.f32 %v1006_v41, %v1007_v40 }
 0x127   :  { %v1042_v54 = vmax.f32 %v1040_v36, %v1041_v43  ;;  %v1047_v44 = vmax.f32 %v1045_v37, %v1046_v27 }
 0x128   :  { %v1053_v45 = vrot.slane %v1052_v24, 2  ;;  %v1058_v33 = vrot.slane %v1057_v32, 4 }
 0x129   :  { %v1048_v48 = vrot.slane %v1047_v44, 1  ;;  %v1102_v15 = vsel %vm1101_vm8, %v1042_v54, %v1100_v42 }
 0x12a   :  { %v1054_v46 = vmax.f32 %v1052_v24, %v1053_v45  ;;  %v1059_v47 = vmax.f32 %v1057_v32, %v1058_v33 }
 0x12b   :  { %v1049_v49 = vmax.f32 %v1047_v44, %v1048_v48 }
 0x12c   :  { %v1055_v11 = vrot.slane %v1054_v46, 1  ;;  %v1060_v2 = vrot.slane %v1059_v47, 2 }
 0x12d   :  { %v1104_v34 = vsel %vm1103_vm9, %v1049_v49, %v1102_v15 }
 0x12e   :  { %v1061_v13 = vmax.f32 %v1059_v47, %v1060_v2  ;;  %v1056_v51 = vmax.f32 %v1054_v46, %v1055_v11 }
 0x130   :  { %v1062_v52 = vrot.slane %v1061_v13, 1  ;;  %v1106_v3 = vsel %vm1105_vm10, %v1056_v51, %v1104_v34 }
 0x132   :  { %v1063_v20 = vmax.f32 %v1061_v13, %v1062_v52 }
 0x134   :  { %v1108_v50 = vsel %vm1107_vm11, %v1063_v20, %v1106_v3 }
 0x135   :  { %1509 = vmatmul.mubr.f32.vlgmr.msra.gmra.mrb[16].mxu1 %v1108_v50 }
 0x208   :  { %v1176_v38 = vpop.f32.mrb[16].mxu1 }
 0x209   :  { %v1177_v39 = vadd.f32 %v1250_v21, %v1176_v38  ;;  %v1510_v53 = vpop.f32.mrb[17].mxu1 }
 0x20b   :  { %1180 = vst [vmem:[%s2133_s6] sm:$0xff] %v1177_v39 }

</bundles_post_ra>
